<compile_context>
chip_gen: v7x
topology: tpu7x:2x2x1
jax: 0.10.0
libtpu: 0.0.40
codegen_flags: <defaults>
</compile_context>

<pallas_src>
import functools

import jax
import jax.numpy as jnp
from jax.experimental import pallas as pl
from jax.experimental.pallas import tpu as pltpu


# ---------------------------------------------------------------------------
# Kernel 1: mean-pool over seq + clamped L2 normalize (per input tensor).
# ---------------------------------------------------------------------------
def _pool_normalize_kernel(x_ref, out_ref, acc_ref, *, seq_len, sublane_split):
    # Grid = (bsz_tiles, seq_tiles); seq is the reduction ("arbitrary") axis.
    # program_id / num_programs stay at the top level, never inside pl.when.
    seq_idx = pl.program_id(1)
    last_seq = pl.num_programs(1) - 1

    @pl.when(seq_idx == 0)
    def _init():
        acc_ref[...] = jnp.zeros_like(acc_ref)

    x = x_ref[...].astype(jnp.float32)                       # (bt, st, h)
    if sublane_split:
        bt, st, h = x_ref.shape
        # Fold seq into groups of 8 sublanes: the hot loop is pure aligned
        # full-vreg VPU adds; the cross-sublane collapse is deferred.
        acc_ref[...] += jnp.sum(x.reshape(bt, st // 8, 8, h), axis=1)
    else:
        acc_ref[...] += jnp.sum(x, axis=1)

    @pl.when(seq_idx == last_seq)
    def _finalize():
        acc = acc_ref[...]
        if sublane_split:
            acc = jnp.sum(acc, axis=1)                       # collapse 8 sublanes
        mean = acc * jnp.float32(1.0 / seq_len)              # (bt, h)
        # torch: x / max(||x||, 1e-8)  ==  x * rsqrt(max(sum(x^2), 1e-16))
        sumsq = jnp.sum(mean * mean, axis=1, keepdims=True)
        inv_norm = jax.lax.rsqrt(jnp.maximum(sumsq, jnp.float32(1e-16)))
        out_ref[...] = mean * inv_norm


# ---------------------------------------------------------------------------
# Kernel 2: sim = a_norm @ b_norm.T with fill_diagonal_(1).
# ---------------------------------------------------------------------------
def _sim_diag_kernel(a_ref, b_ref, out_ref, *, rows_per_block):
    row0 = pl.program_id(0) * rows_per_block                 # top level (not in pl.when)
    sim = jax.lax.dot_general(
        a_ref[...], b_ref[...], (((1,), (1,)), ((), ())),
        preferred_element_type=jnp.float32)                  # (rows, bsz)
    row = jax.lax.broadcasted_iota(jnp.int32, sim.shape, 0) + row0
    col = jax.lax.broadcasted_iota(jnp.int32, sim.shape, 1)
    out_ref[...] = jnp.where(row == col, jnp.float32(1.0), sim)


# ---------------------------------------------------------------------------
# Tiling / VMEM planning helpers.
# ---------------------------------------------------------------------------
def _vmem_budget_and_cap():
    try:
        phys = int(pltpu.get_tpu_info().vmem_capacity_bytes)
    except Exception:
        phys = 0
    if phys < (32 << 20):          # unknown / emulated backend -> assume v7x (64 MiB)
        phys = 64 << 20
    budget = min(phys * 2 // 5, 48 << 20)   # plan well below physical VMEM
    cap = phys - (8 << 20)                  # never request a limit past physical
    return budget, cap


def _pick_pool_tiles(bsz, seq, hidden, itemsize, budget):
    pack = 8 * max(1, 4 // itemsize)        # sublane packing: 8 (f32) / 16 (bf16)

    # bsz tiles: prefer 2 blocks (keeps both v7x TensorCores streaming) when
    # bsz/2 stays 8-aligned; smaller tiles only as a VMEM-pressure fallback.
    # With f2 pre-pooled, tiling bsz never duplicates HBM traffic.
    bsz_cands = []
    if bsz % 2 == 0 and (bsz // 2) % 8 == 0:
        bsz_cands.append(bsz // 2)
    bsz_cands.append(bsz)
    for c in (256, 128, 64, 32, 16, 8):
        if c < bsz and bsz % c == 0 and c not in bsz_cands:
            bsz_cands.append(c)

    seq_cands = [seq] + [c for c in (2048, 1024, 512, 256, 128, 64, 32, 16)
                         if c < seq and seq % c == 0 and c % pack == 0]

    def vmem_need(bt, st):
        in_blk = bt * st * hidden * itemsize     # input tile (bf16/f32)
        cast_tmp = bt * st * hidden * 4          # f32 cast of the tile
        acc = bt * 8 * hidden * 4                # resident f32 accumulator
        out_blk = bt * hidden * 4
        return 2 * in_blk + cast_tmp + acc + 2 * out_blk

    for bt in bsz_cands:
        for st in seq_cands:                     # largest seq tile first
            if vmem_need(bt, st) <= budget:
                return bt, st, vmem_need(bt, st)
    bt, st = bsz_cands[-1], seq_cands[-1]
    return bt, st, vmem_need(bt, st)


# ---------------------------------------------------------------------------
# Wrappers.
# ---------------------------------------------------------------------------
def _pool_normalize(x):
    """[bsz, seq, hidden] -> [bsz, hidden] f32, mean over seq + clamped L2 norm."""
    bsz, seq, hidden = x.shape
    itemsize = jnp.dtype(x.dtype).itemsize
    budget, cap = _vmem_budget_and_cap()
    bsz_tile, seq_tile, need = _pick_pool_tiles(bsz, seq, hidden, itemsize, budget)
    n_bsz = bsz // bsz_tile
    n_seq = seq // seq_tile

    sublane_split = (seq_tile % 8 == 0) and (hidden % 128 == 0)
    acc_shape = (bsz_tile, 8, hidden) if sublane_split else (bsz_tile, hidden)
    vmem_limit = int(min(max(need + (8 << 20), 32 << 20), cap))

    kernel = functools.partial(_pool_normalize_kernel,
                               seq_len=seq, sublane_split=sublane_split)
    return pl.pallas_call(
        kernel,
        out_shape=jax.ShapeDtypeStruct((bsz, hidden), jnp.float32),
        grid_spec=pltpu.PrefetchScalarGridSpec(
            num_scalar_prefetch=0,
            grid=(n_bsz, n_seq),
            in_specs=[pl.BlockSpec((bsz_tile, seq_tile, hidden),
                                   lambda bi, si: (bi, si, 0))],
            # Same output block across the seq axis -> resident, written once.
            out_specs=pl.BlockSpec((bsz_tile, hidden), lambda bi, si: (bi, 0)),
            scratch_shapes=[pltpu.VMEM(acc_shape, jnp.float32)],
        ),
        compiler_params=pltpu.CompilerParams(
            dimension_semantics=("parallel", "arbitrary"),
            vmem_limit_bytes=vmem_limit),
    )(x)


def _similarity_with_unit_diag(a_norm, b_norm):
    """[bsz, hidden] x [bsz, hidden] -> [bsz, bsz] cosine matrix, diag = 1."""
    bsz, hidden = a_norm.shape
    rows_tile = bsz
    for cand in (512, 256, 128):                 # tile rows only for large bsz
        if cand < bsz and bsz % cand == 0:
            rows_tile = cand
            break
    n_rows = bsz // rows_tile

    kernel = functools.partial(_sim_diag_kernel, rows_per_block=rows_tile)
    return pl.pallas_call(
        kernel,
        out_shape=jax.ShapeDtypeStruct((bsz, bsz), jnp.float32),
        grid_spec=pltpu.PrefetchScalarGridSpec(
            num_scalar_prefetch=0,
            grid=(n_rows,),
            in_specs=[pl.BlockSpec((rows_tile, hidden), lambda i: (i, 0)),
                      pl.BlockSpec((bsz, hidden), lambda i: (0, 0))],
            out_specs=pl.BlockSpec((rows_tile, bsz), lambda i: (i, 0)),
        ),
        compiler_params=pltpu.CompilerParams(
            dimension_semantics=("parallel",)),
    )(a_norm, b_norm)


def similarity_calculator(f1_tokens: jax.Array, f2_tokens: jax.Array) -> jax.Array:
    """Cosine-similarity matrix with unit diagonal.

    f1_tokens, f2_tokens: [bsz, seq, hidden] "last_hidden_state" (bf16 or f32)
    returns: [bsz, bsz] float32
    """
    bsz, seq, hidden = f1_tokens.shape
    assert f2_tokens.shape == (bsz, seq, hidden)
    a_norm = _pool_normalize(f1_tokens)      # each input streamed from HBM once
    b_norm = _pool_normalize(f2_tokens)
    return _similarity_with_unit_diag(a_norm, b_norm)


# ---------------------------------------------------------------------------
# Pure-JAX reference + self-test.
# ---------------------------------------------------------------------------
def _reference(f1_tokens, f2_tokens):
    m1 = jnp.mean(f1_tokens.astype(jnp.float32), axis=1)
    m2 = jnp.mean(f2_tokens.astype(jnp.float32), axis=1)
    eps = 1e-8
    a = m1 / jnp.maximum(jnp.linalg.norm(m1, axis=1, keepdims=True), eps)
    b = m2 / jnp.maximum(jnp.linalg.norm(m2, axis=1, keepdims=True), eps)
    sim = jnp.dot(a, b.T, precision=jax.lax.Precision.HIGHEST)
    n = sim.shape[0]
    return sim.at[jnp.arange(n), jnp.arange(n)].set(1.0)


if __name__ == "__main__":
    key = jax.random.PRNGKey(0)
    k1, k2 = jax.random.split(key)

    # Small shapes; bf16 in HBM like a real BERT last_hidden_state.
    bsz, seq, hidden = 16, 64, 128
    f1_tokens = jax.random.normal(k1, (bsz, seq, hidden),
                                  dtype=jnp.float32).astype(jnp.bfloat16)
    f2_tokens = jax.random.normal(k2, (bsz, seq, hidden),
                                  dtype=jnp.float32).astype(jnp.bfloat16)

    out = jax.block_until_ready(similarity_calculator(f1_tokens, f2_tokens))

    ref = _reference(f1_tokens, f2_tokens)
    assert out.shape == (bsz, bsz)
    assert jnp.allclose(out, ref, atol=1e-2, rtol=1e-2), "mismatch vs reference"

    print("KERNEL_OK")
</pallas_src>

<mosaic_0001>
module attributes {stable_mosaic.version = 11 : i64} {
  func.func @_pool_normalize_kernel(%arg0: i32, %arg1: i32, %arg2: memref<8x64x128xbf16, #tpu.memory_space<vmem>>, %arg3: memref<8x128xf32, #tpu.memory_space<vmem>>, %arg4: memref<8x8x128xf32, #tpu.memory_space<vmem>>) attributes {dimension_semantics = [#tpu.dimension_semantics<parallel>, #tpu.dimension_semantics<arbitrary>], iteration_bounds = array<i64: 2, 1>, scalar_prefetch = 0 : i64, scratch_operands = 1 : i64, tpu.core_type = #tpu.core_type<tc>, window_params = [{transform_indices = @transform_0, window_bounds = array<i64: 8, 64, 128>}, {transform_indices = @transform_1, window_bounds = array<i64: 8, 128>}]} {
    %c0_i32 = arith.constant 0 : i32
    %0 = arith.cmpi eq, %arg1, %c0_i32 : i32
    %1 = arith.extui %0 : i1 to i32
    %c0_i32_0 = arith.constant 0 : i32
    %2 = arith.cmpi ne, %1, %c0_i32_0 : i32
    scf.if %2 {
      %cst_11 = arith.constant 0.000000e+00 : f32
      %13 = vector.broadcast %cst_11 : f32 to vector<8x8x128xf32>
      %c0_12 = arith.constant 0 : index
      %c0_13 = arith.constant 0 : index
      %c0_14 = arith.constant 0 : index
      %14 = vector.load %arg4[%c0_12, %c0_13, %c0_14] : memref<8x8x128xf32, #tpu.memory_space<vmem>>, vector<8x8x128xf32>
      tpu.vector_store %arg4[%c0_12, %c0_13, %c0_14], %13 {strides = array<i32>} : memref<8x8x128xf32, #tpu.memory_space<vmem>>, vector<8x8x128xf32>,
    } else {
    }
    %c0 = arith.constant 0 : index
    %c0_1 = arith.constant 0 : index
    %c0_2 = arith.constant 0 : index
    %3 = vector.load %arg2[%c0, %c0_1, %c0_2] : memref<8x64x128xbf16, #tpu.memory_space<vmem>>, vector<8x64x128xbf16>
    %4 = arith.extf %3 : vector<8x64x128xbf16> to vector<8x64x128xf32>
    %c0_3 = arith.constant 0 : index
    %c0_4 = arith.constant 0 : index
    %c0_5 = arith.constant 0 : index
    %5 = vector.load %arg4[%c0_3, %c0_4, %c0_5] : memref<8x8x128xf32, #tpu.memory_space<vmem>>, vector<8x8x128xf32>
    %6 = vector.shape_cast %4 : vector<8x64x128xf32> to vector<8x8x8x128xf32>
    %cst = arith.constant dense<0.000000e+00> : vector<8x8x128xf32>
    %7 = vector.multi_reduction <add>, %6, %cst [1] : vector<8x8x8x128xf32> to vector<8x8x128xf32>
    %8 = arith.addf %5, %7 : vector<8x8x128xf32>
    %c0_6 = arith.constant 0 : index
    %c0_7 = arith.constant 0 : index
    %c0_8 = arith.constant 0 : index
    %9 = vector.load %arg4[%c0_6, %c0_7, %c0_8] : memref<8x8x128xf32, #tpu.memory_space<vmem>>, vector<8x8x128xf32>
    tpu.vector_store %arg4[%c0_6, %c0_7, %c0_8], %8 {strides = array<i32>} : memref<8x8x128xf32, #tpu.memory_space<vmem>>, vector<8x8x128xf32>,
    %c0_i32_9 = arith.constant 0 : i32
    %10 = arith.cmpi eq, %arg1, %c0_i32_9 : i32
    %11 = arith.extui %10 : i1 to i32
    %c0_i32_10 = arith.constant 0 : i32
    %12 = arith.cmpi ne, %11, %c0_i32_10 : i32
    scf.if %12 {
      %c0_11 = arith.constant 0 : index
      %c0_12 = arith.constant 0 : index
      %c0_13 = arith.constant 0 : index
      %13 = vector.load %arg4[%c0_11, %c0_12, %c0_13] : memref<8x8x128xf32, #tpu.memory_space<vmem>>, vector<8x8x128xf32>
      %cst_14 = arith.constant dense<0.000000e+00> : vector<8x128xf32>
      %14 = vector.multi_reduction <add>, %13, %cst_14 [1] : vector<8x8x128xf32> to vector<8x128xf32>
      %cst_15 = arith.constant 1.562500e-02 : f32
      %15 = vector.broadcast %cst_15 : f32 to vector<8x128xf32>
      %16 = arith.mulf %14, %15 : vector<8x128xf32>
      %17 = arith.mulf %16, %16 : vector<8x128xf32>
      %cst_16 = arith.constant dense<0.000000e+00> : vector<8xf32>
      %18 = vector.multi_reduction <add>, %17, %cst_16 [1] : vector<8x128xf32> to vector<8xf32>
      %19 = vector.shape_cast %18 : vector<8xf32> to vector<8x1xf32>
      %cst_17 = arith.constant 1.000000e-16 : f32
      %20 = vector.broadcast %cst_17 : f32 to vector<8x1xf32>
      %21 = arith.maximumf %19, %20 : vector<8x1xf32>
      %22 = math.rsqrt %21 : vector<8x1xf32>
      %23 = vector.broadcast %22 : vector<8x1xf32> to vector<8x128xf32>
      %24 = arith.mulf %16, %23 : vector<8x128xf32>
      %c0_18 = arith.constant 0 : index
      %c0_19 = arith.constant 0 : index
      %25 = vector.load %arg3[%c0_18, %c0_19] : memref<8x128xf32, #tpu.memory_space<vmem>>, vector<8x128xf32>
      tpu.vector_store %arg3[%c0_18, %c0_19], %24 {strides = array<i32>} : memref<8x128xf32, #tpu.memory_space<vmem>>, vector<8x128xf32>,
    } else {
    }
    return
  }
  func.func @transform_0(%arg0: i32, %arg1: i32) -> (i32, i32, i32) {
    %c0_i32 = arith.constant 0 : i32
    %c0_i32_0 = arith.constant 0 : i32
    return %arg0, %arg1, %c0_i32 : i32, i32, i32
  }
  func.func @transform_1(%arg0: i32, %arg1: i32) -> (i32, i32) {
    %c0_i32 = arith.constant 0 : i32
    %c0_i32_0 = arith.constant 0 : i32
    return %arg0, %c0_i32 : i32, i32
  }
}

</mosaic_0001>

<bundles_post_ra>
// kernel: tpu_custom_call.1
= control target key start
LH: loop header
LB: loop body
LE: loop exit
PB: predicated region body
PF: predicated region fallthrough
CT: control target
= control target key end

     0   :  { %6 = vsyncpa [#allocation4], 0  ;;  %s1385_s0 = inlined_call_operand.hbm [shape: bf16[16,64,128], index: 0, kind: input, shape index: {}]   ;;  %s1386_s1 = inlined_call_operand.hbm [shape: f32[16,128], index: 1, kind: output, shape index: {}]  }
   0x1   :  { %8 = vsyncpa [#allocation4 + $0x1], 0 }
   0x2   :  { %9 = vsyncpa [#allocation5], 0 }
   0x3   :  { %11 = vsyncpa [#allocation5 + $0x1], 0  ;;  %s989_s6 = smov 0   ;;  %s991_s7 = smov 0  }
   0x4   :  { %s993_s8 = smov 0   ;;  %s995_s9 = smov 0  }
   0x5   :  { %s997_s10 = smov 0   ;;  %s999_s11 = smov 0  }
   0x6 LB: > { %s619_s12 = sadd.s32 4294967295, %s973_s11   ;;  %s620_s13 = sadd.s32 4294967294, %s973_s11   ;;  %s973_s11 = sphi %s999_s11, %s17_s11   ;;  %s969_s10 = sphi %s997_s10, %s1429_s10   ;;  %s965_s9 = sphi %s995_s9, %s1428_s9   ;;  %s961_s8 = sphi %s993_s8, %s1427_s8   ;;  %s957_s7 = sphi %s991_s7, %s1426_s7   ;;  %s953_s6 = sphi %s989_s6, %s1425_s6  }
   0x7   : > { %s29_s14 = sadd.s32 1, %s969_s10  ;;  %s38_s15 = sadd.s32 1, %s961_s8 }
   0x8   : > { %p31_p0 = scmp.ge.s32.totalorder %s29_s14, 2  ;;  %p45_p1 = scmp.ne.s32.totalorder %s961_s8, %s957_s7 }
   0x9   : > { %p46_p2 = scmp.eq.s32.totalorder %s973_s11, 0  ;;  %p51_p3 = scmp.ne.s32.totalorder %s957_s7, %s953_s6 }
   0xa   : > { %s1431_s14 = smov (%p31_p0, %s29_s14), 0  ;;  %p52_p5 = scmp.eq.s32.totalorder %s619_s12, 0 }
   0xb   : > { %p1030_p4 = por %p46_p2, %p45_p1  ;;  %s33_s17 = ssub.s32 %s969_s10, %s1431_s14 }
   0xc   : > { %p75_p6 = scmp.eq.s32.totalorder %s619_s12, 1  ;;  %p36_p7 = scmp.eq.s32.totalorder %s33_s17, 0 }
   0xd   : > { %p1036_p8 = por %p52_p5, %p51_p3  ;;  %p81_p10 = scmp.eq.s32.totalorder %s620_s13, 1 }
   0xe   : > { %p1040_p9 = por %p75_p6, %p45_p1  ;;  %p807_p13 = scmp.lt.s32.totalorder %s973_s11, 2 }
   0xf   : > { %s1045_s20 = scalar_select %p36_p7, %s961_s8, %s38_s15  }
  0x10   : > { %s1390_s19 = scalar_select %p1040_p9, 1, 0 }
  0x11   : > { %p1047_p11 = por %p81_p10, %p51_p3  ;;  %s101_s22 = sand.u32 1, %s961_s8  }
  0x12   : > { %s623_s23 = sshll.u32 %s101_s22, 8  ;;  %s635_s24 = sshll.u32 %s969_s10, 12 }
  0x13   : > { %s1391_s21 = scalar_select %p1047_p11, 1, 0 }
  0x14   : > { %s1058_s27 = scalar_lea.hbm %s1385_s0, %s635_s24  ;;  %s105_s28 = scalar_lea.vmem [#allocation3], %s623_s23 }
  0x15   : > { %s115_s29 = sshll.u32 %s105_s28, 4  ;;  %p1064_p0 = pnand %p807_p13, %p1030_p4  ;;  %s1060_s29 = int_to_ptr.vmem [resolvable:$true] %s115_s29 }
  0x16   : > { %s1069_s2 = scalar_lea.sflag [#allocation4], %s101_s22  ;;  %s861_s3 = scalar_lea.hbm %s1058_s27, 4096 }
  0x17   : > { %p862_p2 = scmp.ne.s32.totalorder %s1058_s27, %s861_s3  ;;  %p863_p3 = pneg %p1064_p0 }
  0x18   : > { %s866_s12 = scalar_lea.hbm %s1385_s0, 8192  ;;  %p867_p4 = scmp.lt.u32.totalorder %s1058_s27, %s1385_s0 }
  0x19   : > { %p864_p5 = pnand %p863_p3, %p862_p2  ;;  %p868_p7 = scmp.lt.u32.totalorder %s866_s12, %s861_s3 }
  0x1a   : > { %p870_p13 = scmp.lt.u32.totalorder %s861_s3, %s1058_s27 }
  0x1b   : > { %p865_p6 = pneg %p864_p5  ;;  %p869_p10 = por %p868_p7, %p867_p4 }
  0x1d   : > { %p871_p12 = por %p870_p13, %p869_p10 }
  0x1f   : > { %p872_p1 = pnand %p871_p12, %p865_p6 }
  0x21   : > { %875 = shalt.err (!%p872_p1)
}
  0x22   : > { %s876_s16 = scalar_lea.vmem %s1060_s29, 4096  ;;  %s975_s17 = smov [#allocation3]  }
  0x23   : > { %p877_p2 = scmp.ne.s32.totalorder %s1060_s29, %s876_s16  ;;  %s881_s22 = sshll.u32 %s975_s17, 4  ;;  %s882_s22 = int_to_ptr.vmem [resolvable:$false] %s881_s22 }
  0x24   : > { %s883_s23 = scalar_lea.vmem %s882_s22, 8192  ;;  %p884_p9 = scmp.lt.s32.totalorder %s1060_s29, %s882_s22 }
  0x25   : > { %p879_p5 = pnand %p877_p2, %p863_p3  ;;  %p885_p4 = scmp.lt.s32.totalorder %s883_s23, %s876_s16 }
  0x27   : > { %p880_p11 = pneg %p879_p5  ;;  %p886_p7 = por %p885_p4, %p884_p9 }
  0x29   : > { %p887_p10 = pnand %p886_p7, %p880_p11 }
  0x2b   : > { %890 = shalt.err (!%p887_p10)
}
  0x2c   : > { %s976_s24 = smov 64   ;;  %s977_s25 = smov 4  }
  0x2d   : > { %802 = dma.hbm_to_vmem [thread:$0]  (!%p1064_p0), %s1058_s27, 4096, %s1060_s29, %s1069_s2, %s976_s24, %s976_s24, %s977_s25  }
  0x2e   : > { %p123_p12 = scmp.lt.s32.totalorder %s973_s11, 3  ;;  %p1393_p1 = scmp.ge.s32.totalorder %s973_s11, 1 }
  0x30   : > { %p124_p3 = pnand %p1393_p1, %p123_p12 }
  0x31   : > { %s1101_s26 = sand.u32 (!%p124_p3), 1, %s957_s7  }
  0x32   : > { %127 = sbr.rel (%p124_p3) target bundleno = 296 (0x128), region = 24  ;;  %s628_s28 = sshll.u32 (!%p124_p3), %s1101_s26, 8 }
  0x33   : > { %s130_s3 = scalar_lea.sflag (!%p124_p3), [#allocation4], %s1101_s26  ;;  %s1105_s4 = scalar_lea.vmem (!%p124_p3), [#allocation3], %s628_s28 }
  0x39   : > { %944 = dma.done.wait (%p1036_p8), %s130_s3, 4096  }
  0x3a   : > { %946 = vsyncadd (%p1036_p8), %s130_s3, 4294963200  ;;  %v1112_v0 = vld [vmem:[%s1105_s4] sm:$0xff]   ;;  %v1115_v1 = vld [vmem:[%s1105_s4 + $0x8] sm:$0xff]   ;;  %vm457_vm0 = vcmask 1041409   ;;  %vm459_vm1 = vcmask 1042434   ;;  %vm461_vm2 = vcmask 1043459  }
  0x3b   : > { %v1118_v2 = vld [vmem:[%s1105_s4 + $0x10] sm:$0xff]   ;;  %v638_v3 = vunpack.c.l.bf16 %v1112_v0  ;;  %v639_v4 = vunpack.c.h.bf16 %v1112_v0  ;;  %v642_v5 = vunpack.c.l.bf16 %v1115_v1  ;;  %v1125_v7 = vld [vmem:[%s1105_s4 + $0x18] sm:$0xff]   ;;  %v1128_v8 = vld [vmem:[%s1105_s4 + $0x20] sm:$0xff]   ;;  %vm463_vm3 = vcmask 1044484   ;;  %s629_s18 = sshll.u32 %s1101_s26, 3  ;;  %s631_s27 = sshll.u32 %s965_s9, 7 }
  0x3c   : > { %v1131_v9 = vld [vmem:[%s1105_s4 + $0x28] sm:$0xff]   ;;  %v1138_v14 = vld [vmem:[%s1105_s4 + $0x30] sm:$0xff]   ;;  %v1141_v15 = vld [vmem:[%s1105_s4 + $0x38] sm:$0xff]   ;;  %v654_v17 = vunpack.c.l.bf16 %v1128_v8  ;;  %v655_v18 = vunpack.c.h.bf16 %v1128_v8  ;;  %vm465_vm4 = vcmask 1045509   ;;  %vm467_vm5 = vcmask 1046534   ;;  %s151_s29 = scalar_lea.vmem [#allocation6], %s629_s18  ;;  %s1335_s12 = scalar_lea.hbm %s1386_s1, %s631_s27 }
  0x3d   : > { %v1144_v16 = vld [vmem:[%s1105_s4 + $0x40] sm:$0xff]   ;;  %v658_v19 = vunpack.c.l.bf16 %v1131_v9  ;;  %v1151_v21 = vld [vmem:[%s1105_s4 + $0x48] sm:$0xff]   ;;  %v1154_v22 = vld [vmem:[%s1105_s4 + $0x50] sm:$0xff]   ;;  %v302_v20 = vadd.f32 %v639_v4, %v638_v3  ;;  %vm469_vm6 = vcmask 1047559   ;;  %s538_s30 = sshll.u32 %s151_s29, 4  ;;  %s525_s9 = scalar_lea.sflag [#allocation5], %s1101_s26  ;;  %s1337_s30 = int_to_ptr.vmem [resolvable:$true] %s538_s30 }
  0x3e   : > { %v1157_v23 = vld [vmem:[%s1105_s4 + $0x58] sm:$0xff]   ;;  %v1164_v28 = vld [vmem:[%s1105_s4 + $0x60] sm:$0xff]   ;;  %v1167_v29 = vld [vmem:[%s1105_s4 + $0x68] sm:$0xff]   ;;  %v670_v30 = vunpack.c.l.bf16 %v1144_v16  ;;  %v671_v31 = vunpack.c.h.bf16 %v1144_v16  ;;  %v674_v32 = vunpack.c.l.bf16 %v1151_v21  ;;  %s891_s13 = scalar_lea.vmem %s1337_s30, 128  ;;  %p1422_p9 = scmp.ne.s32.totalorder %s1390_s19, 0 }
  0x3f   : > { %v1174_v34 = vld [vmem:[%s1105_s4 + $0x70] sm:$0xff]   ;;  %v1177_v35 = vld [vmem:[%s1105_s4 + $0x78] sm:$0xff]   ;;  %v779_v40 = vld [vmem:[%s1105_s4 + $0x80] sm:$0xff]   ;;  %v686_v42 = vunpack.c.l.bf16 %v1164_v28  ;;  %v687_v43 = vunpack.c.h.bf16 %v1164_v28  ;;  %v303_v44 = vadd.f32 %v642_v5, %v302_v20  ;;  %v1394_v4 = vunpack.c.l.bf16 %v1167_v29  ;;  %p892_p8 = scmp.ne.s32.totalorder %s1337_s30, %s891_s13  ;;  %s978_s15 = smov [#allocation6]  }
  0x40   : > { %v1185_v41 = vld [vmem:[%s1105_s4 + $0x88] sm:$0xff]   ;;  %v1192_v46 = vld [vmem:[%s1105_s4 + $0x90] sm:$0xff]   ;;  %v1195_v47 = vld [vmem:[%s1105_s4 + $0x98] sm:$0xff]   ;;  %v702_v54 = vunpack.c.l.bf16 %v779_v40  ;;  %v703_v55 = vunpack.c.h.bf16 %v779_v40  ;;  %v1397_v5 = vunpack.c.h.bf16 %v1151_v21  ;;  %s895_s16 = sshll.u32 %s978_s15, 4  ;;  %s896_s16 = int_to_ptr.vmem [resolvable:$false] %s895_s16 }
  0x41   : > { %v783_v52 = vld [vmem:[%s1105_s4 + $0xa0] sm:$0xff]   ;;  %v1203_v53 = vld [vmem:[%s1105_s4 + $0xa8] sm:$0xff]   ;;  %v706_v56 = vunpack.c.l.bf16 %v1185_v41  ;;  %v707_v57 = vunpack.c.h.bf16 %v1185_v41  ;;  %v1208_v58 = vld [vmem:[%s1105_s4 + $0xb0] sm:$0xff]   ;;  %p893_p11 = pnand %p892_p8, %p1422_p9  ;;  %s897_s17 = scalar_lea.vmem %s896_s16, 256 }
  0x42   : > { %v1211_v59 = vld [vmem:[%s1105_s4 + $0xb8] sm:$0xff]   ;;  %v787_v28 = vld [vmem:[%s1105_s4 + $0xc0] sm:$0xff]   ;;  %v788_v40 = vld [vmem:[%s1105_s4 + $0xc8] sm:$0xff]   ;;  %v718_v51 = vunpack.c.l.bf16 %v783_v52  ;;  %v719_v39 = vunpack.c.h.bf16 %v783_v52  ;;  %v722_v41 = vunpack.c.l.bf16 %v1203_v53  ;;  %v723_v27 = vunpack.c.h.bf16 %v1203_v53  ;;  %p898_p6 = scmp.lt.s32.totalorder %s1337_s30, %s896_s16  ;;  %p899_p13 = scmp.lt.s32.totalorder %s897_s17, %s891_s13 }
  0x43   : > { %v1222_v13 = vld [vmem:[%s1105_s4 + $0xd0] sm:$0xff]   ;;  %v1225_v50 = vld [vmem:[%s1105_s4 + $0xd8] sm:$0xff]   ;;  %v726_v38 = vunpack.c.l.bf16 %v1208_v58  ;;  %v727_v62 = vunpack.c.h.bf16 %v1208_v58  ;;  %v791_v12 = vld [vmem:[%s1105_s4 + $0xe0] sm:$0xff]   ;;  %v734_v52 = vunpack.c.l.bf16 %v787_v28  ;;  %v735_v49 = vunpack.c.h.bf16 %v787_v28  ;;  %p894_p0 = pneg %p893_p11 }
  0x44   : > { %v792_v61 = vld [vmem:[%s1105_s4 + $0xe8] sm:$0xff]   ;;  %v738_v37 = vunpack.c.l.bf16 %v788_v40  ;;  %v739_v25 = vunpack.c.h.bf16 %v788_v40  ;;  %v793_v11 = vld [vmem:[%s1105_s4 + $0xf0] sm:$0xff]   ;;  %v1235_v53 = vld [vmem:[%s1105_s4 + $0xf8] sm:$0xff]   ;;  %v742_v60 = vunpack.c.l.bf16 %v1222_v13  ;;  %v743_v48 = vunpack.c.h.bf16 %v1222_v13  ;;  %p900_p2 = por %p899_p13, %p898_p6 }
  0x45   : > { %v746_v36 = vunpack.c.l.bf16 %v1225_v50  ;;  %v750_v63 = vunpack.c.l.bf16 %v791_v12  ;;  %v751_v24 = vunpack.c.h.bf16 %v791_v12  ;;  %v754_v26 = vunpack.c.l.bf16 %v792_v61 }
  0x46   : > { %v755_v10 = vunpack.c.h.bf16 %v792_v61  ;;  %v758_v45 = vunpack.c.l.bf16 %v793_v11  ;;  %v759_v33 = vunpack.c.h.bf16 %v793_v11  ;;  %v762_v28 = vunpack.c.l.bf16 %v1235_v53  ;;  %p901_p5 = pnand %p900_p2, %p894_p0 }
  0x47   : > { %v763_v40 = vunpack.c.h.bf16 %v1235_v53  ;;  %v309_v13 = vadd.f32 %v655_v18, %v654_v17  ;;  %v316_v12 = vadd.f32 %v671_v31, %v670_v30  ;;  %v323_v11 = vadd.f32 %v687_v43, %v686_v42 }
  0x48   : > { %v330_v61 = vadd.f32 %v703_v55, %v702_v54  ;;  %v337_v58 = vadd.f32 %v719_v39, %v718_v51  ;;  %v344_v6 = vadd.f32 %v735_v49, %v734_v52  ;;  %v351_v53 = vadd.f32 %v751_v24, %v750_v63 }
  0x49   : > { %v310_v0 = vadd.f32 %v658_v19, %v309_v13  ;;  %v317_v3 = vadd.f32 %v674_v32, %v316_v12  ;;  %v324_v8 = vadd.f32 %v1394_v4, %v323_v11  ;;  %v1395_v31 = vunpack.c.h.bf16 %v1115_v1 }
  0x4a   : > { %v331_v17 = vadd.f32 %v706_v56, %v330_v61  ;;  %v338_v16 = vadd.f32 %v722_v41, %v337_v58  ;;  %v345_v18 = vadd.f32 %v738_v37, %v344_v6  ;;  %v352_v30 = vadd.f32 %v754_v26, %v351_v53 }
  0x4b   : > { %v304_v39 = vadd.f32 %v1395_v31, %v303_v44  ;;  %v1396_v24 = vunpack.c.h.bf16 %v1131_v9  ;;  %v318_v20 = vadd.f32 %v1397_v5, %v317_v3  ;;  %v1398_v19 = vunpack.c.h.bf16 %v1167_v29 }
  0x4c   : > { %v332_v32 = vadd.f32 %v707_v57, %v331_v17  ;;  %v339_v49 = vadd.f32 %v723_v27, %v338_v16  ;;  %v346_v51 = vadd.f32 %v739_v25, %v345_v18  ;;  %v353_v54 = vadd.f32 %v755_v10, %v352_v30 }
  0x4d   : > { %v311_v42 = vadd.f32 %v1396_v24, %v310_v0  ;;  %v325_v43 = vadd.f32 %v1398_v19, %v324_v8  ;;  %v1399_v55 = vunpack.c.l.bf16 %v1118_v2  ;;  %v1400_v26 = vunpack.c.l.bf16 %v1138_v14 }
  0x4e   : > { %v1401_v37 = vunpack.c.l.bf16 %v1154_v22  ;;  %v1402_v44 = vunpack.c.l.bf16 %v1174_v34  ;;  %v1403_v56 = vunpack.c.l.bf16 %v1192_v46  ;;  %v340_v63 = vadd.f32 %v726_v38, %v339_v49 }
  0x4f   : > { %v305_v6 = vadd.f32 %v1399_v55, %v304_v39  ;;  %v312_v1 = vadd.f32 %v1400_v26, %v311_v42  ;;  %v347_v57 = vadd.f32 %v742_v60, %v346_v51  ;;  %v354_v27 = vadd.f32 %v758_v45, %v353_v54 }
  0x50   : > { %v319_v9 = vadd.f32 %v1401_v37, %v318_v20  ;;  %v326_v21 = vadd.f32 %v1402_v44, %v325_v43  ;;  %v333_v29 = vadd.f32 %v1403_v56, %v332_v32  ;;  %v1404_v10 = vunpack.c.h.bf16 %v1118_v2 }
  0x51   : > { %v1405_v41 = vunpack.c.h.bf16 %v1138_v14  ;;  %v1406_v58 = vunpack.c.h.bf16 %v1154_v22  ;;  %v1407_v12 = vunpack.c.h.bf16 %v1174_v34  ;;  %v1408_v61 = vunpack.c.h.bf16 %v1192_v46 }
  0x52   : > { %v306_v25 = vadd.f32 %v1404_v10, %v305_v6  ;;  %v341_v0 = vadd.f32 %v727_v62, %v340_v63  ;;  %v348_v3 = vadd.f32 %v743_v48, %v347_v57  ;;  %v355_v38 = vadd.f32 %v759_v33, %v354_v27 }
  0x53   : > { %v313_v52 = vadd.f32 %v1405_v41, %v312_v1  ;;  %v320_v13 = vadd.f32 %v1406_v58, %v319_v9  ;;  %v327_v11 = vadd.f32 %v1407_v12, %v326_v21  ;;  %v334_v53 = vadd.f32 %v1408_v61, %v333_v29 }
  0x54   : > { %v1409_v45 = vunpack.c.l.bf16 %v1125_v7  ;;  %v1410_v2 = vunpack.c.l.bf16 %v1141_v15  ;;  %v1411_v14 = vunpack.c.l.bf16 %v1157_v23  ;;  %v1412_v22 = vunpack.c.l.bf16 %v1177_v35 }
  0x55   : > { %v1413_v34 = vunpack.c.l.bf16 %v1195_v47  ;;  %v1414_v46 = vunpack.c.l.bf16 %v1211_v59  ;;  %v349_v48 = vadd.f32 %v746_v36, %v348_v3  ;;  %v356_v33 = vadd.f32 %v762_v28, %v355_v38 }
  0x56   : > { %v307_v60 = vadd.f32 %v1409_v45, %v306_v25  ;;  %v314_v4 = vadd.f32 %v1410_v2, %v313_v52  ;;  %v321_v8 = vadd.f32 %v1411_v14, %v320_v13  ;;  %v328_v17 = vadd.f32 %v1412_v22, %v327_v11 }
  0x57   : > { %v335_v16 = vadd.f32 %v1413_v34, %v334_v53  ;;  %v342_v62 = vadd.f32 %v1414_v46, %v341_v0  ;;  %v1415_v18 = vunpack.c.h.bf16 %v1125_v7  ;;  %v1416_v31 = vunpack.c.h.bf16 %v1141_v15 }
  0x58   : > { %v1417_v24 = vunpack.c.h.bf16 %v1157_v23  ;;  %v1418_v5 = vunpack.c.h.bf16 %v1177_v35  ;;  %v1419_v19 = vunpack.c.h.bf16 %v1195_v47  ;;  %v1420_v32 = vunpack.c.h.bf16 %v1211_v59 }
  0x59   : > { %v308_v30 = vadd.f32 %v1415_v18, %v307_v60  ;;  %v315_v39 = vadd.f32 %v1416_v31, %v314_v4  ;;  %v1421_v36 = vunpack.c.h.bf16 %v1225_v50  ;;  %v357_v7 = vadd.f32 %v763_v40, %v356_v33 }
  0x5a   : > { %v322_v42 = vadd.f32 %v1417_v24, %v321_v8  ;;  %v329_v20 = vadd.f32 %v1418_v5, %v328_v17  ;;  %v336_v43 = vadd.f32 %v1419_v19, %v335_v16  ;;  %v343_v49 = vadd.f32 %v1420_v32, %v342_v62 }
  0x5b   : > { %v350_v28 = vadd.f32 %v1421_v36, %v349_v48  ;;  %v385_v51 = vrot.slane %v308_v30, 4  ;;  %v391_v54 = vrot.slane %v315_v39, 4  ;;  %v427_v1 = vrot.slane %v357_v7, 4 }
  0x5c   : > { %v397_v15 = vrot.slane %v322_v42, 4  ;;  %v403_v55 = vrot.slane %v329_v20, 4  ;;  %v409_v6 = vrot.slane %v336_v43, 4  ;;  %v415_v23 = vrot.slane %v343_v49, 4 }
  0x5d   : > { %v421_v26 = vrot.slane %v350_v28, 4  ;;  %v386_v35 = vadd.f32 %v385_v51, %v308_v30  ;;  %v392_v37 = vadd.f32 %v391_v54, %v315_v39  ;;  %v428_v56 = vadd.f32 %v427_v1, %v357_v7 }
  0x5e   : > { %v398_v9 = vadd.f32 %v397_v15, %v322_v42  ;;  %v404_v47 = vadd.f32 %v403_v55, %v329_v20  ;;  %v410_v44 = vadd.f32 %v409_v6, %v336_v43  ;;  %v416_v21 = vadd.f32 %v415_v23, %v343_v49 }
  0x5f   : > { %v422_v59 = vadd.f32 %v421_v26, %v350_v28  ;;  %v387_v29 = vrot.slane %v386_v35, 2  ;;  %v393_v50 = vrot.slane %v392_v37, 2  ;;  %v429_v25 = vrot.slane %v428_v56, 2 }
  0x60   : > { %v399_v63 = vrot.slane %v398_v9, 2  ;;  %v405_v40 = vrot.slane %v404_v47, 2  ;;  %v411_v57 = vrot.slane %v410_v44, 2  ;;  %v417_v27 = vrot.slane %v416_v21, 2 }
  0x61   : > { %v423_v10 = vrot.slane %v422_v59, 2  ;;  %v388_v41 = vadd.f32 %v387_v29, %v386_v35  ;;  %v394_v52 = vadd.f32 %v393_v50, %v392_v37  ;;  %v430_v53 = vadd.f32 %v429_v25, %v428_v56 }
  0x62   : > { %v400_v58 = vadd.f32 %v399_v63, %v398_v9  ;;  %v406_v13 = vadd.f32 %v405_v40, %v404_v47  ;;  %v412_v12 = vadd.f32 %v411_v57, %v410_v44  ;;  %v418_v11 = vadd.f32 %v417_v27, %v416_v21 }
  0x63   : > { %v424_v61 = vadd.f32 %v423_v10, %v422_v59  ;;  %v389_v0 = vrot.slane %v388_v41, 1  ;;  %v395_v3 = vrot.slane %v394_v52, 1  ;;  %v431_v14 = vrot.slane %v430_v53, 1 }
  0x64   : > { %v401_v38 = vrot.slane %v400_v58, 1  ;;  %v407_v45 = vrot.slane %v406_v13, 1  ;;  %v413_v60 = vrot.slane %v412_v12, 1  ;;  %v419_v2 = vrot.slane %v418_v11, 1 }
  0x65   : > { %v425_v4 = vrot.slane %v424_v61, 1  ;;  %v390_v8 = vadd.f32 %v389_v0, %v388_v41  ;;  %v396_v22 = vadd.f32 %v395_v3, %v394_v52  ;;  %v432_v48 = vadd.f32 %v431_v14, %v430_v53 }
  0x66   : > { %v402_v17 = vadd.f32 %v401_v38, %v400_v58  ;;  %v408_v34 = vadd.f32 %v407_v45, %v406_v13  ;;  %v414_v16 = vadd.f32 %v413_v60, %v412_v12  ;;  %v420_v46 = vadd.f32 %v419_v2, %v418_v11 }
  0x67   : > { %v426_v62 = vadd.f32 %v425_v4, %v424_v61  ;;  %v433_v33 = vmul.f32 0.015625, %v390_v8  ;;  %v434_v18 = vmul.f32 0.015625, %v396_v22  ;;  %v440_v5 = vmul.f32 0.015625, %v432_v48 }
  0x68   : > { %v435_v30 = vmul.f32 0.015625, %v402_v17  ;;  %v436_v31 = vmul.f32 0.015625, %v408_v34  ;;  %v437_v39 = vmul.f32 0.015625, %v414_v16  ;;  %v438_v24 = vmul.f32 0.015625, %v420_v46 }
  0x69   : > { %v439_v42 = vmul.f32 0.015625, %v426_v62  ;;  %v441_v20 = vmul.f32 %v433_v33, %v433_v33  ;;  %v442_v19 = vmul.f32 %v434_v18, %v434_v18  ;;  %v448_v54 = vmul.f32 %v440_v5, %v440_v5 }
  0x6a   : > { %v443_v43 = vmul.f32 %v435_v30, %v435_v30  ;;  %v444_v32 = vmul.f32 %v436_v31, %v436_v31  ;;  %v445_v49 = vmul.f32 %v437_v39, %v437_v39  ;;  %v446_v36 = vmul.f32 %v438_v24, %v438_v24 }
  0x6b   : > { %v458_v28 = vsel %vm457_vm0, %v442_v19, %v441_v20  ;;  %v447_v7 = vmul.f32 %v439_v42, %v439_v42 }
  0x6c   : > { %v460_v51 = vsel %vm459_vm1, %v443_v43, %v458_v28 }
  0x6d   : > { %v462_v15 = vsel %vm461_vm2, %v444_v32, %v460_v51 }
  0x6e   : > { %v464_v55 = vsel %vm463_vm3, %v445_v49, %v462_v15 }
  0x6f   : > { %v466_v6 = vsel %vm465_vm4, %v446_v36, %v464_v55 }
  0x70   : > { %v468_v23 = vsel %vm467_vm5, %v447_v7, %v466_v6 }
  0x71   : > { %v470_v26 = vsel %vm469_vm6, %v448_v54, %v468_v23 }
  0x72   : > { %472 = vadd.xlane.f32.xlu0 %v470_v26 }
  0xff   : > { %v473_v1 = vpop.xlane.xlu0 %472 }
 0x100   : > { %v474_v35 = vmax.f32 %v473_v1, 1e-16 }
 0x102   : > { %859 = vrsqrt.f32 %v474_v35 }
 0x10c   : > { %v860_v37 = vpop.eup %859 }
 0x10d   : > { %v477_v9 = vrot.slane %v860_v37, 1  ;;  %v478_v47 = vrot.slane %v860_v37, 2  ;;  %v479_v44 = vrot.slane %v860_v37, 3  ;;  %v480_v21 = vrot.slane %v860_v37, 4 }
 0x10e   : > { %v481_v59 = vrot.slane %v860_v37, 5  ;;  %v482_v56 = vrot.slane %v860_v37, 6  ;;  %v483_v29 = vrot.slane %v860_v37, 7  ;;  %v492_v27 = vmul.f32 %v860_v37, %v433_v33 }
 0x10f   : > { %v493_v50 = vmul.f32 %v477_v9, %v434_v18  ;;  %v494_v63 = vmul.f32 %v478_v47, %v435_v30  ;;  %v495_v40 = vmul.f32 %v479_v44, %v436_v31  ;;  %v496_v57 = vmul.f32 %v480_v21, %v437_v39 }
 0x110   : > { %v497_v10 = vmul.f32 %v481_v59, %v438_v24  ;;  %v498_v52 = vmul.f32 %v482_v56, %v439_v42  ;;  %v499_v58 = vmul.f32 %v483_v29, %v440_v5 }
 0x111   : > { %v508_v25 = vrot.slane %v493_v50, 7  ;;  %v510_v41 = vrot.slane %v494_v63, 6  ;;  %v512_v12 = vrot.slane %v495_v40, 5  ;;  %v514_v61 = vrot.slane %v496_v57, 4 }
 0x112   : > { %v516_v0 = vrot.slane %v497_v10, 3  ;;  %v518_v38 = vrot.slane %v498_v52, 2  ;;  %v520_v60 = vrot.slane %v499_v58, 1 }
 0x113   : > { %v509_v13 = vsel %vm457_vm0, %v508_v25, %v492_v27 }
 0x114   : > { %v511_v11 = vsel %vm459_vm1, %v510_v41, %v509_v13 }
 0x115   : > { %v513_v53 = vsel %vm461_vm2, %v512_v12, %v511_v11 }
 0x116   : > { %v515_v3 = vsel %vm463_vm3, %v514_v61, %v513_v53 }
 0x117   : > { %v517_v45 = vsel %vm465_vm4, %v516_v0, %v515_v3 }
 0x118   : > { %v519_v2 = vsel %vm467_vm5, %v518_v38, %v517_v45 }
 0x119   : > { %v521_v4 = vsel %vm469_vm6, %v520_v60, %v519_v2 }
 0x11a   : > { %523 = vst [vmem:[%s151_s29] sm:$0xff] %v521_v4 }
 0x11b   : > { %904 = shalt.err (!%p901_p5)
}
 0x11c   : > { %s905_s22 = scalar_lea.hbm %s1335_s12, 128  ;;  %s909_s25 = scalar_lea.hbm %s1386_s1, 256 }
 0x11d   : > { %p906_p4 = scmp.ne.s32.totalorder %s1335_s12, %s905_s22  ;;  %p910_p12 = scmp.lt.u32.totalorder %s1335_s12, %s1386_s1 }
 0x11e   : > { %p911_p1 = scmp.lt.u32.totalorder %s909_s25, %s905_s22  ;;  %p913_p8 = scmp.lt.u32.totalorder %s905_s22, %s1335_s12 }
 0x11f   : > { %p907_p7 = pnand %p906_p4, %p1422_p9 }
 0x120   : > { %p912_p3 = por %p911_p1, %p910_p12 }
 0x121   : > { %p908_p10 = pneg %p907_p7 }
 0x122   : > { %p914_p11 = por %p913_p8, %p912_p3 }
 0x124   : > { %p915_p0 = pnand %p914_p11, %p908_p10 }
 0x126   : > { %918 = shalt.err (!%p915_p0)
}
 0x127   : > { %797 = dma.vmem_to_hbm [thread:$0]  (%p1422_p9), %s1337_s30, 128, %s1335_s12, %s525_s9  }
 0x128 PF: > { %s550_s3 = sand.u32 1, %s953_s6   ;;  %p1423_p6 = scmp.ne.s32.totalorder %s1391_s21, 0 }
 0x129   : > { %p1424_p13 = scmp.ge.s32.totalorder %s973_s11, 2  ;;  %s551_s4 = scalar_lea.sflag [#allocation5], %s550_s3 }
 0x12b   : > { %p804_p2 = pnand %p1424_p13, %p1423_p6 }
 0x12d   : > { %948 = dma.done.wait (!%p804_p2), %s551_s4, 128  }
 0x12e   : > { %950 = vsyncadd (!%p804_p2), %s551_s4, 4294967168  ;;  %s17_s11 = sadd.s32 1, %s973_s11   ;;  %s1425_s6 = smov %s957_s7 }
 0x12f   : > { %p14_p5 = scmp.ge.s32.totalorder %s17_s11, 4   ;;  %s1426_s7 = smov %s961_s8 }
 0x130   : > { %s1427_s8 = smov %s1045_s20  ;;  %s1428_s9 = smov %s969_s10 }
 0x131   : > { %s1429_s10 = smov %s1431_s14  ;;  %16 = sbr.rel (!%p14_p5) target bundleno = 6 (0x6), region = 77 }
 0x138   :  { %556 = vsyncpa [#allocation4], 1 }
 0x139   :  { %558 = vsyncpa [#allocation4 + $0x1], 1 }
 0x13a   :  { %559 = vsyncpa [#allocation5], 1 }
 0x13b   :  { %561 = vsyncpa [#allocation5 + $0x1], 1 }

</bundles_post_ra>
